<compile_context>
chip_gen: v5e
topology: v5e:2x2
jax: 0.10.0
libtpu: 0.0.40
codegen_flags: <defaults>
</compile_context>

<pallas_src>
import functools
import math

import jax
import jax.numpy as jnp
from jax.experimental import pallas as pl
from jax.experimental.pallas import tpu as pltpu


def _hyp_linear_kernel(x_ref, w_ref, b_ref, o_ref, *, k, scale):
    x = x_ref[...].astype(jnp.float32)        # (tn, Kin)
    w = w_ref[...].astype(jnp.float32)        # (Kin, F+1)  column 0 is zeros
    b = b_ref[...].astype(jnp.float32)        # (1,  F+1)   column 0 is zero

    # Space features land directly in output layout; lane 0 is zero by
    # construction of the augmented weight/bias.
    xs = jnp.dot(x, w,
                 preferred_element_type=jnp.float32,
                 precision=jax.lax.Precision.HIGHEST) + b      # (tn, F+1)

    # Single cross-lane reduction: lane 0 contributes 0 to the sum of squares.
    ss = jnp.sum(xs * xs, axis=-1, keepdims=True)              # (tn, 1)
    xt = jnp.sqrt(ss + k)                                      # time coordinate

    lane = jax.lax.broadcasted_iota(jnp.int32, xs.shape, dimension=1)
    out = jnp.where(lane == 0, xt, xs)

    if scale != 1.0:   # trace-time constant: skip the multiply when no rescale
        out = out * scale

    o_ref[...] = out.astype(o_ref.dtype)


def _choose_tile(n, tile_n):
    """Pick a row-tile: large (amortize grid overhead), multiple of 8, and
    leaving >=2 grid steps when possible (dual-TensorCore sharding)."""
    if n <= 16:
        return n
    tn = min(tile_n, pl.cdiv(n, 2))
    if tn < n:
        tn = max(8, (tn // 8) * 8)
    return tn


def hyp_linear(x, weight, bias=None, *, k=1.0, k_out=None, tile_n=1024):
    """HypLinear forward.

    x:      (..., in_features + 1)   hyperbolic input (time coord included)
    weight: (out_features, in_features + 1)   torch nn.Linear convention
    bias:   (out_features,) or None
    Returns (..., out_features + 1).
    """
    orig_shape = x.shape
    kin = orig_shape[-1]
    f = weight.shape[0]
    n = math.prod(orig_shape[:-1])

    x2d = x.reshape(n, kin)

    # Augment weight / bias with a zero "time" column so the matmul produces
    # the output layout [time_slot(=0), space...] directly.
    w_t = jnp.transpose(weight)                                   # (Kin, F)
    w_aug = jnp.concatenate([jnp.zeros((kin, 1), w_t.dtype), w_t], axis=1)
    if bias is None:
        b_aug = jnp.zeros((1, f + 1), x.dtype)
    else:
        b_aug = jnp.concatenate(
            [jnp.zeros((1,), bias.dtype), bias], axis=0)[None, :]  # (1, F+1)

    scale = 1.0 if k_out is None else math.sqrt(float(k_out) / float(k))
    tn = _choose_tile(n, tile_n)

    kernel = functools.partial(_hyp_linear_kernel, k=float(k), scale=float(scale))

    out2d = pl.pallas_call(
        kernel,
        out_shape=jax.ShapeDtypeStruct((n, f + 1), x.dtype),
        grid_spec=pltpu.PrefetchScalarGridSpec(
            num_scalar_prefetch=0,
            grid=(pl.cdiv(n, tn),),
            in_specs=[
                pl.BlockSpec((tn, kin), lambda i: (i, 0)),     # activations
                pl.BlockSpec((kin, f + 1), lambda i: (0, 0)),  # augmented weight
                pl.BlockSpec((1, f + 1), lambda i: (0, 0)),    # augmented bias
            ],
            out_specs=pl.BlockSpec((tn, f + 1), lambda i: (i, 0)),
        ),
        compiler_params=pltpu.CompilerParams(
            dimension_semantics=("parallel",)),
    )(x2d, w_aug, b_aug)

    return out2d.reshape(orig_shape[:-1] + (f + 1,))


def _reference(x, weight, bias, k=1.0, k_out=None):
    xs = jnp.dot(x.astype(jnp.float32), weight.T.astype(jnp.float32),
                 precision=jax.lax.Precision.HIGHEST)
    if bias is not None:
        xs = xs + bias.astype(jnp.float32)
    xt = jnp.sqrt(jnp.sum(xs ** 2, axis=-1, keepdims=True) + k)
    out = jnp.concatenate([xt, xs], axis=-1)
    if k_out is not None:
        out = out * math.sqrt(float(k_out) / float(k))
    return out


if __name__ == "__main__":
    key = jax.random.PRNGKey(0)
    k_x, k_w, k_b = jax.random.split(key, 3)

    batch, channels, seq = 2, 4, 16
    in_features, out_features = 32, 32
    kin = in_features + 1                      # module operates on [..., in+1]

    x = jax.random.normal(k_x, (batch, channels, seq, kin), dtype=jnp.float32)

    # xavier_uniform(gain=sqrt(2)) weight, zero bias — as in reset_parameters().
    limit = math.sqrt(2.0) * math.sqrt(6.0 / (kin + out_features))
    weight = jax.random.uniform(k_w, (out_features, kin), jnp.float32,
                                minval=-limit, maxval=limit)
    bias = jnp.zeros((out_features,), jnp.float32)

    k_val = 1.0      # manifold.k      (synthetic deterministic value)
    k_out = 2.0      # manifold_out.k

    out = hyp_linear(x, weight, bias, k=k_val, k_out=k_out)
    out = jax.block_until_ready(out)

    ref = _reference(x, weight, bias, k=k_val, k_out=k_out)
    assert out.shape == x.shape[:-1] + (out_features + 1,), (out.shape,)
    max_err = float(jnp.max(jnp.abs(out - ref)))
    assert jnp.allclose(out, ref, atol=1e-4, rtol=1e-4), max_err

    print("KERNEL_OK")
</pallas_src>

<mosaic_0001>
module attributes {stable_mosaic.version = 11 : i64} {
  func.func @_hyp_linear_kernel(%arg0: i32, %arg1: memref<64x33xf32, #tpu.memory_space<vmem>>, %arg2: memref<33x33xf32, #tpu.memory_space<vmem>>, %arg3: memref<1x33xf32, #tpu.memory_space<vmem>>, %arg4: memref<64x33xf32, #tpu.memory_space<vmem>>) attributes {dimension_semantics = [#tpu.dimension_semantics<parallel>], iteration_bounds = array<i64: 2>, scalar_prefetch = 0 : i64, scratch_operands = 0 : i64, tpu.core_type = #tpu.core_type<tc>, window_params = [{transform_indices = @transform_0, window_bounds = array<i64: 64, 33>}, {pipeline_mode = #tpu.pipeline_mode<synchronous>, transform_indices = @transform_1, window_bounds = array<i64: 33, 33>}, {pipeline_mode = #tpu.pipeline_mode<synchronous>, transform_indices = @transform_2, window_bounds = array<i64: 1, 33>}, {transform_indices = @transform_3, window_bounds = array<i64: 64, 33>}]} {
    %c0 = arith.constant 0 : index
    %c0_0 = arith.constant 0 : index
    %0 = vector.load %arg1[%c0, %c0_0] : memref<64x33xf32, #tpu.memory_space<vmem>>, vector<64x33xf32>
    %c0_1 = arith.constant 0 : index
    %c0_2 = arith.constant 0 : index
    %1 = vector.load %arg2[%c0_1, %c0_2] : memref<33x33xf32, #tpu.memory_space<vmem>>, vector<33x33xf32>
    %c0_3 = arith.constant 0 : index
    %c0_4 = arith.constant 0 : index
    %2 = vector.load %arg3[%c0_3, %c0_4] : memref<1x33xf32, #tpu.memory_space<vmem>>, vector<1x33xf32>
    %cst = arith.constant dense<0.000000e+00> : vector<64x33xf32>
    %3 = tpu.matmul %0, %1, %cst {dimension_numbers = #tpu.dot_dimension_numbers<[1], [0], [0], [1], [0, 0, 1, 1], [], []>, precision = #tpu.contract_precision<fp32>} : vector<64x33xf32>, vector<33x33xf32>, vector<64x33xf32> -> vector<64x33xf32>
    %4 = vector.broadcast %2 : vector<1x33xf32> to vector<64x33xf32>
    %5 = arith.addf %3, %4 : vector<64x33xf32>
    %6 = arith.mulf %5, %5 : vector<64x33xf32>
    %cst_5 = arith.constant dense<0.000000e+00> : vector<64xf32>
    %7 = vector.multi_reduction <add>, %6, %cst_5 [1] : vector<64x33xf32> to vector<64xf32>
    %8 = vector.shape_cast %7 : vector<64xf32> to vector<64x1xf32>
    %cst_6 = arith.constant 1.000000e+00 : f32
    %9 = vector.broadcast %cst_6 : f32 to vector<64x1xf32>
    %10 = arith.addf %8, %9 : vector<64x1xf32>
    %11 = math.sqrt %10 : vector<64x1xf32>
    %12 = tpu.iota {dimensions = array<i32: 1>} : vector<64x33xi32>
    %c0_i32 = arith.constant 0 : i32
    %13 = vector.broadcast %c0_i32 : i32 to vector<64x33xi32>
    %14 = arith.cmpi eq, %12, %13 : vector<64x33xi32>
    %15 = vector.shape_cast %11 : vector<64x1xf32> to vector<64x1xf32>
    %16 = vector.broadcast %15 : vector<64x1xf32> to vector<64x33xf32>
    %17 = arith.select %14, %16, %5 : vector<64x33xi1>, vector<64x33xf32>
    %cst_7 = arith.constant 1.41421354 : f32
    %18 = vector.broadcast %cst_7 : f32 to vector<64x33xf32>
    %19 = arith.mulf %17, %18 : vector<64x33xf32>
    %c0_8 = arith.constant 0 : index
    %c0_9 = arith.constant 0 : index
    %20 = vector.load %arg4[%c0_8, %c0_9] : memref<64x33xf32, #tpu.memory_space<vmem>>, vector<64x33xf32>
    tpu.vector_store %arg4[%c0_8, %c0_9], %19 {strides = array<i32>} : memref<64x33xf32, #tpu.memory_space<vmem>>, vector<64x33xf32>,
    return
  }
  func.func @transform_0(%arg0: i32) -> (i32, i32) {
    %c0_i32 = arith.constant 0 : i32
    %c0_i32_0 = arith.constant 0 : i32
    return %arg0, %c0_i32 : i32, i32
  }
  func.func @transform_1(%arg0: i32) -> (i32, i32) {
    %c0_i32 = arith.constant 0 : i32
    %c0_i32_0 = arith.constant 0 : i32
    %c0_i32_1 = arith.constant 0 : i32
    return %c0_i32, %c0_i32_0 : i32, i32
  }
  func.func @transform_2(%arg0: i32) -> (i32, i32) {
    %c0_i32 = arith.constant 0 : i32
    %c0_i32_0 = arith.constant 0 : i32
    %c0_i32_1 = arith.constant 0 : i32
    return %c0_i32, %c0_i32_0 : i32, i32
  }
  func.func @transform_3(%arg0: i32) -> (i32, i32) {
    %c0_i32 = arith.constant 0 : i32
    %c0_i32_0 = arith.constant 0 : i32
    return %arg0, %c0_i32 : i32, i32
  }
}

</mosaic_0001>

<bundles_post_ra>
// kernel: tpu_custom_call.1
= control target key start
LH: loop header
LB: loop body
LE: loop exit
PB: predicated region body
PF: predicated region fallthrough
CT: control target
= control target key end

     0   :  { %s928_s12 = smov 0   ;;  %s1262_s0 = inlined_call_operand.vmem [shape: f32[128,33], index: 0, kind: input, shape index: {}]   ;;  %s1263_s1 = inlined_call_operand.vmem [shape: f32[33,33], index: 1, kind: input, shape index: {}]   ;;  %s1264_s2 = inlined_call_operand.vmem [shape: f32[1,33], index: 2, kind: input, shape index: {}]   ;;  %s1265_s3 = inlined_call_operand.vmem [shape: f32[128,33], index: 3, kind: output, shape index: {}]  }
   0x1 LB: > { %s854_s13 = sadd.s32 4294967295, %s906_s12   ;;  %p858_p0 = scmp.ge.s32.totalorder %s906_s12, 1  ;;  %s906_s12 = sphi %s928_s12, %s13_s12  }
   0x2   : > { %p138_p1 = scmp.lt.s32.totalorder %s906_s12, 3 }
   0x4   : > { %p139_p2 = pnand %p858_p0, %p138_p1 }
   0x5   : > { %s859_s20 = sshll.u32 (!%p139_p2), %s854_s13, 3 }
   0x6   : > { %142 = sbr.rel (%p139_p2) target bundleno = 404 (0x194), region = 32  ;;  %p163_p3 = scmp.lt.s32.totalorder (!%p139_p2), %s859_s20, 15 }
   0xb   : > { %v186_v0 = vld [vmem:[%s1263_s1 + $0x20] sm:$0x1]  ;;  %vm216_vm0 = vcmask 1040384   ;;  %v185_v1 = vld [vmem:[%s1263_s1 + $0x18] sm:$0xff]  ;;  %v184_v2 = vld [vmem:[%s1263_s1 + $0x10] sm:$0xff]  ;;  %s1267_s20 = smov (!%p163_p3, %s859_s20), 15 }
   0xc   : > { %v218_v3 = vsel %vm216_vm0, %v186_v0, 0  ;;  %v945_v4 = vand.u32 4294901760, %v185_v1  ;;  %v947_v5 = vand.u32 4294901760, %v184_v2  ;;  %v183_v6 = vld [vmem:[%s1263_s1 + $0x8] sm:$0xff]  ;;  %v182_v7 = vld [vmem:[%s1263_s1] sm:$0xff]  ;;  %s860_s25 = sshll.u32 %s1267_s20, 3 }
   0xd   : > { %v955_v8 = vand.u32 4294901760, %v218_v3  ;;  %v957_v9 = vand.u32 4294901760, %v183_v6  ;;  %v959_v10 = vand.u32 4294901760, %v182_v7  ;;  %vm191_vm1 = vcmask 269312   ;;  %s988_s28 = scalar_lea.vmem %s1262_s0, %s860_s25  ;;  %s1217_s6 = scalar_lea.vmem %s1265_s3, %s860_s25 }
   0xe   : > { %v962_v11 = vsub.f32 %v185_v1, %v945_v4  ;;  %v965_v12 = vsub.f32 %v184_v2, %v947_v5  ;;  %v178_v23 = vld [vmem:[%s988_s28 + $0x20] sm:$0xff]  ;;  %v179_v24 = vld [vmem:[%s988_s28 + $0x28] sm:$0xff]  ;;  %v180_v32 = vld [vmem:[%s988_s28 + $0x30] sm:$0xff] }
   0xf   : > { %865 = vmatpush.msra.mxu2 %v955_v8  ;;  %v318_v13 = vsub.f32 %v218_v3, %v955_v8  ;;  %v972_v14 = vsub.f32 %v183_v6, %v957_v9  ;;  %232 = vmatpush.msra.mxu0 %v955_v8  ;;  %v976_v15 = vsub.f32 %v182_v7, %v959_v10  ;;  %v205_v26 = vsel %vm191_vm1, %v178_v23, 0  ;;  %v174_v27 = vld [vmem:[%s988_s28] sm:$0xff]  ;;  %v175_v28 = vld [vmem:[%s988_s28 + $0x8] sm:$0xff]  ;;  %v176_v45 = vld [vmem:[%s988_s28 + $0x10] sm:$0xff] }
  0x10   : > { %v325_v16 = vand.u32 4294901760, %v962_v11  ;;  %v331_v17 = vand.u32 4294901760, %v965_v12  ;;  %v1008_v30 = vand.u32 4294901760, %v205_v26  ;;  %v208_v31 = vsel %vm191_vm1, %v179_v24, 0  ;;  %v181_v57 = vld [vmem:[%s988_s28 + $0x38] sm:$0xff] }
  0x11   : > { %866 = vmatpush.msra.mxu2 %v945_v4  ;;  %v319_v18 = vand.u32 4294901760, %v318_v13  ;;  %v337_v19 = vand.u32 4294901760, %v972_v14  ;;  %v343_v20 = vand.u32 4294901760, %v976_v15  ;;  %234 = vmatpush.msra.mxu0 %v945_v4  ;;  %v1017_v36 = vand.u32 4294901760, %v208_v31  ;;  %v177_v1 = vld [vmem:[%s988_s28 + $0x18] sm:$0xff] }
  0x12   : > { %v326_v21 = vsub.f32 %v962_v11, %v325_v16  ;;  %v332_v22 = vsub.f32 %v965_v12, %v331_v17  ;;  %v1020_v38 = vsub.f32 %v205_v26, %v1008_v30  ;;  %v193_v39 = vsel %vm191_vm1, %v174_v27, 0 }
  0x13   : > { %v320_v25 = vsub.f32 %v318_v13, %v319_v18  ;;  %867 = vmatpush.msra.mxu2 %v947_v5  ;;  %236 = vmatpush.msra.mxu0 %v947_v5  ;;  %v338_v29 = vsub.f32 %v972_v14, %v337_v19  ;;  %v344_v35 = vsub.f32 %v976_v15, %v343_v20  ;;  %v196_v40 = vsel %vm191_vm1, %v175_v28, 0 }
  0x14   : > { %v327_v34 = vand.u32 4294901760, %v326_v21  ;;  %v333_v37 = vand.u32 4294901760, %v332_v22  ;;  %v1026_v41 = vsub.f32 %v208_v31, %v1017_v36  ;;  %v1028_v42 = vand.u32 4294901760, %v193_v39 }
  0x15   : > { %v321_v33 = vand.u32 4294901760, %v320_v25  ;;  %868 = vmatpush.msra.mxu2 %v957_v9  ;;  %238 = vmatpush.msra.mxu0 %v957_v9  ;;  %v211_v43 = vsel %vm191_vm1, %v180_v32, 0  ;;  %v1031_v44 = vand.u32 4294901760, %v196_v40  ;;  %v275_v46 = vand.u32 4294901760, %v1020_v38 }
  0x16   : > { %v339_v47 = vand.u32 4294901760, %v338_v29  ;;  %v1037_v48 = vsub.f32 %v193_v39, %v1028_v42  ;;  %v283_v51 = vand.u32 4294901760, %v1026_v41  ;;  %v1047_v52 = vand.u32 4294901760, %v211_v43 }
  0x17   : > { %870 = vmatpush.msra.mxu3 %v321_v33  ;;  %869 = vmatpush.msra.mxu2 %v959_v10  ;;  %v1040_v49 = vsub.f32 %v196_v40, %v1031_v44  ;;  %v276_v50 = vsub.f32 %v1020_v38, %v275_v46  ;;  %v199_v53 = vsel %vm191_vm1, %v176_v45, 0  ;;  %v345_v54 = vand.u32 4294901760, %v344_v35 }
  0x18   : > { %322 = vmatpush.msra.mxu1 %v321_v33  ;;  %240 = vmatpush.msra.mxu0 %v959_v10  ;;  %v243_v55 = vand.u32 4294901760, %v1037_v48  ;;  %v1059_v60 = vand.u32 4294901760, %v199_v53  ;;  %v284_v61 = vsub.f32 %v1026_v41, %v283_v51  ;;  %v1065_v62 = vsub.f32 %v211_v43, %v1047_v52 }
  0x19   : > { %393 = vmatpush.msrb.mxu2 %v318_v13  ;;  %871 = vmatpush.msra.mxu3 %v327_v34  ;;  %v277_v56 = vand.u32 4294901760, %v276_v50  ;;  %v251_v59 = vand.u32 4294901760, %v1040_v49  ;;  %v214_v0 = vsel %vm191_vm1, %v181_v57, 0  ;;  %v202_v13 = vsel %vm191_vm1, %v177_v1, 0 }
  0x1a   : > { %328 = vmatpush.msra.mxu1 %v327_v34  ;;  %531 = vmatpush.msrb.mxu0 %v319_v18  ;;  %v244_v58 = vsub.f32 %v1037_v48, %v243_v55  ;;  %v258_v3 = vsub.f32 %v199_v53, %v1059_v60  ;;  %v285_v6 = vand.u32 4294901760, %v284_v61  ;;  %v291_v7 = vand.u32 4294901760, %v1065_v62 }
  0x1b   : > { %396 = vmatpush.msrb.mxu2 %v962_v11  ;;  %872 = vmatpush.msra.mxu3 %v333_v37  ;;  %v252_v2 = vsub.f32 %v1040_v49, %v251_v59  ;;  %v1080_v11 = vand.u32 4294901760, %v214_v0 }
  0x1c   : > { %334 = vmatpush.msra.mxu1 %v333_v37  ;;  %535 = vmatpush.msrb.mxu0 %v325_v16  ;;  %v245_v63 = vand.u32 4294901760, %v244_v58  ;;  %v292_v18 = vsub.f32 %v1065_v62, %v291_v7 }
  0x1d   : > { %399 = vmatpush.msrb.mxu2 %v965_v12  ;;  %873 = vmatpush.msra.mxu3 %v339_v47  ;;  %v253_v16 = vand.u32 4294901760, %v252_v2  ;;  %v259_v12 = vand.u32 4294901760, %v258_v3  ;;  %v298_v21 = vsub.f32 %v214_v0, %v1080_v11 }
  0x1e   : > { %278 = vmatmul.f32.vlgmr.msra.gmra.mxu2 %v277_v56  ;;  %340 = vmatpush.msra.mxu1 %v339_v47 }
  0x1f   : > { %874 = vmatpush.msra.mxu3 %v345_v54  ;;  %402 = vmatpush.msrb.mxu2 %v972_v14  ;;  %v293_v14 = vand.u32 4294901760, %v292_v18 }
  0x20   : > { %364 = vmatmul.f32.vlgmr.msra.gmra.mxu3 %v1008_v30  ;;  %346 = vmatpush.msra.mxu1 %v345_v54 }
  0x21   : > { %459 = vmatpush.msrb.mxu3 %v955_v8  ;;  %246 = vmatmul.f32.vlgmr.msra.gmra.mxu0 %v245_v63 }
  0x22   : > { %348 = vmatmul.f32.vlgmr.msra.gmra.mxu1 %v1028_v42  ;;  %539 = vmatpush.msrb.mxu0 %v331_v17  ;;  %v265_v17 = vand.u32 4294901760, %v202_v13 }
  0x23   : > { %461 = vmatpush.msrb.mxu3 %v945_v4  ;;  %593 = vmatpush.msrb.mxu1 %v955_v8 }
  0x24   : > { %405 = vmatpush.msrb.mxu2 %v976_v15  ;;  %543 = vmatpush.msrb.mxu0 %v337_v19  ;;  %v266_v8 = vsub.f32 %v202_v13, %v265_v17  ;;  %v299_v19 = vand.u32 4294901760, %v298_v21 }
  0x25   : > { %463 = vmatpush.msrb.mxu3 %v947_v5  ;;  %595 = vmatpush.msrb.mxu1 %v945_v4  ;;  %v260_v4 = vsub.f32 %v258_v3, %v259_v12 }
  0x26   : > { %286 = vmatmul.f32.gmra.mxu2 %v285_v6  ;;  %547 = vmatpush.msrb.mxu0 %v343_v20  ;;  %v267_v15 = vand.u32 4294901760, %v266_v8  ;;  %v300_v20 = vsub.f32 %v298_v21, %v299_v19 }
  0x27   : > { %465 = vmatpush.msrb.mxu3 %v957_v9  ;;  %597 = vmatpush.msrb.mxu1 %v947_v5  ;;  %v261_v22 = vand.u32 4294901760, %v260_v4 }
  0x28   : > { %368 = vmatmul.f32.gmra.mxu3 %v1017_v36  ;;  %v268_v5 = vsub.f32 %v266_v8, %v267_v15  ;;  %v301_v23 = vand.u32 4294901760, %v300_v20 }
  0x29   : > { %254 = vmatmul.f32.gmra.mxu0 %v253_v16  ;;  %467 = vmatpush.msrb.mxu3 %v959_v10 }
  0x2a   : > { %352 = vmatmul.f32.gmra.mxu1 %v1031_v44  ;;  %v269_v24 = vand.u32 4294901760, %v268_v5 }
  0x2b   : > { %599 = vmatpush.msrb.mxu1 %v957_v9 }
  0x2d   : > { %601 = vmatpush.msrb.mxu1 %v959_v10 }
  0x2e   : > { %294 = vmatmul.f32.gmra.mxu2 %v293_v14 }
  0x30   : > { %372 = vmatmul.f32.gmra.mxu3 %v1047_v52 }
  0x31   : > { %262 = vmatmul.f32.gmra.mxu0 %v261_v22 }
  0x32   : > { %356 = vmatmul.f32.gmra.mxu1 %v1059_v60 }
  0x36   : > { %302 = vmatmul.f32.gmra.mxu2 %v301_v23 }
  0x38   : > { %376 = vmatmul.f32.gmra.mxu3 %v1080_v11 }
  0x39   : > { %270 = vmatmul.f32.gmra.mxu0 %v269_v24 }
  0x3a   : > { %360 = vmatmul.f32.gmra.mxu1 %v265_v17 }
  0x3e   : > { %408 = vmatmul.f32.vlgmr.msrb.gmra.mxu2 %v1037_v48 }
  0x40   : > { %471 = vmatmul.f32.vlgmr.msrb.gmra.mxu3 %v243_v55 }
  0x41   : > { %549 = vmatmul.f32.vlgmr.msrb.gmra.mxu0 %v1028_v42 }
  0x42   : > { %603 = vmatmul.f32.vlgmr.msrb.gmra.mxu1 %v1028_v42 }
  0x46   : > { %413 = vmatmul.f32.gmra.mxu2 %v1040_v49 }
  0x48   : > { %477 = vmatmul.f32.gmra.mxu3 %v251_v59 }
  0x49   : > { %553 = vmatmul.f32.gmra.mxu0 %v1031_v44 }
  0x4a   : > { %607 = vmatmul.f32.gmra.mxu1 %v1031_v44 }
  0x4e   : > { %418 = vmatmul.f32.gmra.mxu2 %v258_v3 }
  0x50   : > { %483 = vmatmul.f32.gmra.mxu3 %v259_v12 }
  0x51   : > { %557 = vmatmul.f32.gmra.mxu0 %v1059_v60 }
  0x52   : > { %611 = vmatmul.f32.gmra.mxu1 %v1059_v60 }
  0x56   : > { %423 = vmatmul.f32.gmra.mxu2 %v266_v8 }
  0x58   : > { %489 = vmatmul.f32.gmra.mxu3 %v267_v15 }
  0x59   : > { %561 = vmatmul.f32.gmra.mxu0 %v265_v17 }
  0x5a   : > { %615 = vmatmul.f32.gmra.mxu1 %v265_v17 }
  0x5e   : > { %428 = vmatmul.f32.gmra.mxu2 %v1020_v38  ;;  %v1150_v38 = vld [vmem:[%s1264_s2] ss:$0 sm:$0xff] }
  0x60   : > { %495 = vmatmul.f32.gmra.mxu3 %v275_v46 }
  0x61   : > { %565 = vmatmul.f32.gmra.mxu0 %v1008_v30 }
  0x62   : > { %619 = vmatmul.f32.gmra.mxu1 %v1008_v30 }
  0x66   : > { %433 = vmatmul.f32.gmra.mxu2 %v1026_v41 }
  0x68   : > { %501 = vmatmul.f32.gmra.mxu3 %v283_v51 }
  0x69   : > { %569 = vmatmul.f32.gmra.mxu0 %v1017_v36 }
  0x6a   : > { %623 = vmatmul.f32.gmra.mxu1 %v1017_v36 }
  0x6e   : > { %438 = vmatmul.f32.gmra.mxu2 %v1065_v62 }
  0x70   : > { %507 = vmatmul.f32.gmra.mxu3 %v291_v7 }
  0x71   : > { %573 = vmatmul.f32.gmra.mxu0 %v1047_v52 }
  0x72   : > { %627 = vmatmul.f32.gmra.mxu1 %v1047_v52 }
  0x76   : > { %443 = vmatmul.f32.gmra.mxu2 %v298_v21 }
  0x78   : > { %513 = vmatmul.f32.gmra.mxu3 %v299_v19 }
  0x79   : > { %577 = vmatmul.f32.gmra.mxu0 %v1080_v11 }
  0x7a   : > { %631 = vmatmul.f32.gmra.mxu1 %v1080_v11 }
  0x9e   : > { %v247_v9 = vpop.f32.mrf.mxu0 }
  0x9f   : > { %v349_v10 = vpop.f32.mrf.mxu1  ;;  %v248_v40 = vadd.f32 %v1150_v38, %v247_v9 }
  0xa1   : > { %v279_v25 = vpop.f32.mrf.mxu2  ;;  %v350_v43 = vadd.f32 %v349_v10, %v248_v40 }
  0xa2   : > { %v280_v15 = vadd.f32 %v1150_v38, %v279_v25 }
  0xa3   : > { %v1135_v26 = vpop.f32.mrf.mxu3 }
  0xa4   : > { %v366_v10 = vadd.f32 %v1135_v26, %v280_v15  ;;  %v771_v15 = vlaneseq }
  0xa6   : > { %v255_v27 = vpop.f32.mrf.mxu0 }
  0xa7   : > { %v353_v28 = vpop.f32.mrf.mxu1  ;;  %v256_v47 = vadd.f32 %v1150_v38, %v255_v27 }
  0xa9   : > { %v1137_v29 = vpop.f32.mrf.mxu2  ;;  %v354_v52 = vadd.f32 %v353_v28, %v256_v47 }
  0xaa   : > { %v288_v25 = vadd.f32 %v1150_v38, %v1137_v29 }
  0xab   : > { %v1139_v30 = vpop.f32.mrf.mxu3 }
  0xae   : > { %v263_v31 = vpop.f32.mrf.mxu0 }
  0xaf   : > { %v357_v32 = vpop.f32.mrf.mxu1  ;;  %v264_v58 = vadd.f32 %v1150_v38, %v263_v31 }
  0xb1   : > { %v1141_v33 = vpop.f32.mrf.mxu2  ;;  %v358_v0 = vadd.f32 %v357_v32, %v264_v58 }
  0xb2   : > { %v296_v29 = vadd.f32 %v1150_v38, %v1141_v33 }
  0xb3   : > { %v1143_v34 = vpop.f32.mrf.mxu3 }
  0xb6   : > { %v271_v35 = vpop.f32.mrf.mxu0 }
  0xb7   : > { %v361_v36 = vpop.f32.mrf.mxu1  ;;  %v272_v11 = vadd.f32 %v1150_v38, %v271_v35 }
  0xb9   : > { %v1145_v37 = vpop.f32.mrf.mxu2  ;;  %v362_v21 = vadd.f32 %v361_v36, %v272_v11 }
  0xba   : > { %v304_v33 = vadd.f32 %v1150_v38, %v1145_v37 }
  0xbb   : > { %v1152_v39 = vpop.f32.mrf.mxu3 }
  0xbe   : > { %v550_v41 = vpop.f32.mrf.mxu0 }
  0xbf   : > { %v604_v42 = vpop.f32.mrf.mxu1 }
  0xc1   : > { %v409_v44 = vpop.f32.mrf.mxu2 }
  0xc2   : > { %v410_v45 = vadd.f32 %v409_v44, %v350_v43  ;;  %v370_v43 = vadd.f32 %v1139_v30, %v288_v25 }
  0xc3   : > { %v472_v46 = vpop.f32.mrf.mxu3 }
  0xc4   : > { %v473_v48 = vadd.f32 %v472_v46, %v410_v45 }
  0xc6   : > { %v551_v49 = vadd.f32 %v550_v41, %v473_v48  ;;  %v554_v50 = vpop.f32.mrf.mxu0 }
  0xc7   : > { %v608_v51 = vpop.f32.mrf.mxu1 }
  0xc8   : > { %v1156_v53 = vadd.f32 %v604_v42, %v551_v49 }
  0xc9   : > { %v414_v54 = vpop.f32.mrf.mxu2 }
  0xca   : > { %v415_v55 = vadd.f32 %v414_v54, %v354_v52  ;;  %v635_v56 = vmul.f32 %v1156_v53, %v1156_v53  ;;  %v374_v52 = vadd.f32 %v1143_v34, %v296_v29  ;;  %v378_v34 = vadd.f32 %v1152_v39, %v304_v33 }
  0xcb   : > { %v478_v57 = vpop.f32.mrf.mxu3 }
  0xcc   : > { %v479_v59 = vadd.f32 %v478_v57, %v415_v55  ;;  %v643_v60 = vsel %vm191_vm1, %v635_v56, 0.0 }
  0xcd   : > { %644 = vadd.xlane.f32.xlu0 %v643_v60 }
  0xce   : > { %v555_v61 = vadd.f32 %v554_v50, %v479_v59  ;;  %v558_v62 = vpop.f32.mrf.mxu0 }
  0xcf   : > { %v612_v63 = vpop.f32.mrf.mxu1 }
  0xd0   : > { %v1162_v1 = vadd.f32 %v608_v51, %v555_v61 }
  0xd1   : > { %v419_v2 = vpop.f32.mrf.mxu2 }
  0xd2   : > { %v420_v3 = vadd.f32 %v419_v2, %v358_v0  ;;  %v636_v6 = vmul.f32 %v1162_v1, %v1162_v1 }
  0xd3   : > { %v484_v7 = vpop.f32.mrf.mxu3 }
  0xd4   : > { %v485_v13 = vadd.f32 %v484_v7, %v420_v3  ;;  %v646_v16 = vsel %vm191_vm1, %v636_v6, 0.0 }
  0xd5   : > { %647 = vadd.xlane.f32.xlu0 %v646_v16 }
  0xd6   : > { %v559_v12 = vadd.f32 %v558_v62, %v485_v13  ;;  %v562_v17 = vpop.f32.mrf.mxu0 }
  0xd7   : > { %v616_v18 = vpop.f32.mrf.mxu1 }
  0xd8   : > { %v1168_v4 = vadd.f32 %v612_v63, %v559_v12 }
  0xd9   : > { %v424_v8 = vpop.f32.mrf.mxu2 }
  0xda   : > { %v425_v14 = vadd.f32 %v424_v8, %v362_v21  ;;  %v637_v19 = vmul.f32 %v1168_v4, %v1168_v4 }
  0xdb   : > { %v490_v22 = vpop.f32.mrf.mxu3 }
  0xdc   : > { %v491_v20 = vadd.f32 %v490_v22, %v425_v14  ;;  %v649_v5 = vsel %vm191_vm1, %v637_v19, 0.0 }
  0xdd   : > { %650 = vadd.xlane.f32.xlu1 %v649_v5 }
  0xde   : > { %v563_v23 = vadd.f32 %v562_v17, %v491_v20  ;;  %v566_v24 = vpop.f32.mrf.mxu0 }
  0xdf   : > { %v620_v9 = vpop.f32.mrf.mxu1 }
  0xe0   : > { %v1175_v27 = vadd.f32 %v616_v18, %v563_v23 }
  0xe1   : > { %v429_v28 = vpop.f32.mrf.mxu2 }
  0xe2   : > { %v430_v31 = vadd.f32 %v429_v28, %v366_v10  ;;  %v638_v32 = vmul.f32 %v1175_v27, %v1175_v27 }
  0xe3   : > { %v496_v35 = vpop.f32.mrf.mxu3 }
  0xe4   : > { %v497_v36 = vadd.f32 %v496_v35, %v430_v31  ;;  %v652_v40 = vsel %vm191_vm1, %v638_v32, 0.0 }
  0xe5   : > { %653 = vadd.xlane.f32.xlu1 %v652_v40 }
  0xe6   : > { %v567_v41 = vadd.f32 %v566_v24, %v497_v36  ;;  %v570_v42 = vpop.f32.mrf.mxu0 }
  0xe7   : > { %v624_v45 = vpop.f32.mrf.mxu1 }
  0xe8   : > { %v1183_v26 = vadd.f32 %v620_v9, %v567_v41  ;;  %v1209_v9 = vand.u32 127, %v771_v15 }
  0xe9   : > { %v434_v44 = vpop.f32.mrf.mxu2 }
  0xea   : > { %v435_v46 = vadd.f32 %v434_v44, %v370_v43  ;;  %v639_v47 = vmul.f32 %v1183_v26, %v1183_v26  ;;  %vm773_vm2 = vcmp.eq.s32.totalorder %v1209_v9, 0 }
  0xeb   : > { %v502_v48 = vpop.f32.mrf.mxu3 }
  0xec   : > { %v503_v49 = vadd.f32 %v502_v48, %v435_v46  ;;  %v655_v50 = vsel %vm191_vm1, %v639_v47, 0.0 }
  0xed   : > { %656 = vadd.xlane.f32.xlu2 %v655_v50 }
  0xee   : > { %v571_v51 = vadd.f32 %v570_v42, %v503_v49  ;;  %v574_v55 = vpop.f32.mrf.mxu0 }
  0xef   : > { %v628_v59 = vpop.f32.mrf.mxu1 }
  0xf0   : > { %v1191_v30 = vadd.f32 %v624_v45, %v571_v51 }
  0xf1   : > { %v439_v54 = vpop.f32.mrf.mxu2 }
  0xf2   : > { %v440_v56 = vadd.f32 %v439_v54, %v374_v52  ;;  %v640_v57 = vmul.f32 %v1191_v30, %v1191_v30 }
  0xf3   : > { %v508_v58 = vpop.f32.mrf.mxu3 }
  0xf4   : > { %v509_v60 = vadd.f32 %v508_v58, %v440_v56  ;;  %v658_v61 = vsel %vm191_vm1, %v640_v57, 0.0 }
  0xf5   : > { %659 = vadd.xlane.f32.xlu2 %v658_v61 }
  0xf6   : > { %v575_v62 = vadd.f32 %v574_v55, %v509_v60  ;;  %v578_v7 = vpop.f32.mrf.mxu0 }
  0xf7   : > { %v632_v37 = vpop.f32.mrf.mxu1 }
  0xf8   : > { %v1199_v63 = vadd.f32 %v628_v59, %v575_v62 }
  0xf9   : > { %v444_v0 = vpop.f32.mrf.mxu2 }
  0xfa   : > { %v445_v2 = vadd.f32 %v444_v0, %v378_v34  ;;  %v641_v3 = vmul.f32 %v1199_v63, %v1199_v63 }
  0xfb   : > { %v514_v6 = vpop.f32.mrf.mxu3 }
  0xfc   : > { %v515_v11 = vadd.f32 %v514_v6, %v445_v2  ;;  %v661_v13 = vsel %vm191_vm1, %v641_v3, 0.0 }
  0xfd   : > { %662 = vadd.xlane.f32.xlu0 %v661_v13 }
  0xfe   : > { %v579_v38 = vadd.f32 %v578_v7, %v515_v11 }
 0x100   : > { %v1204_v16 = vadd.f32 %v632_v37, %v579_v38 }
 0x102   : > { %v642_v39 = vmul.f32 %v1204_v16, %v1204_v16 }
 0x104   : > { %v664_v12 = vsel %vm191_vm1, %v642_v39, 0.0 }
 0x105   : > { %665 = vadd.xlane.f32.xlu1 %v664_v12 }
 0x140   : > { %v645_v17 = vpop.xlane.xlu0 %644 }
 0x141   : > { %v667_v18 = vadd.f32 1.0, %v645_v17 }
 0x143   : > { %884 = vrsqrt.f32 %v667_v18  ;;  %vm682_vm3 = vcmp.eq.f32.partialorder %v667_v18, inf  ;;  %v685_v25 = vand.u32 2147483648, %v667_v18  ;;  %vm684_vm4 = vcmp.eq.f32.partialorder %v667_v18, 0.0 }
 0x148   : > { %v648_v21 = vpop.xlane.xlu0 %647 }
 0x149   : > { %v885_v8 = vpop.eup %884  ;;  %v668_v14 = vadd.f32 1.0, %v648_v21 }
 0x14a   : > { %v676_v19 = vmul.f32 %v885_v8, %v667_v18 }
 0x14b   : > { %886 = vrsqrt.f32 %v668_v14  ;;  %vm694_vm5 = vcmp.eq.f32.partialorder %v668_v14, inf  ;;  %v697_v51 = vand.u32 2147483648, %v668_v14  ;;  %vm696_vm6 = vcmp.eq.f32.partialorder %v668_v14, 0.0 }
 0x14c   : > { %v677_v22 = vmul.f32 %v885_v8, %v676_v19 }
 0x14e   : > { %v678_v20 = vmul.f32 0.5, %v677_v22 }
 0x150   : > { %v679_v5 = vsub.f32 1.5, %v678_v20  ;;  %v651_v23 = vpop.xlane.xlu1 %650 }
 0x151   : > { %v887_v24 = vpop.eup %886  ;;  %v669_v10 = vadd.f32 1.0, %v651_v23 }
 0x152   : > { %v680_v28 = vmul.f32 %v885_v8, %v679_v5  ;;  %v688_v31 = vmul.f32 %v887_v24, %v668_v14 }
 0x153   : > { %888 = vrsqrt.f32 %v669_v10  ;;  %vm706_vm7 = vcmp.eq.f32.partialorder %v669_v10, inf  ;;  %v709_v0 = vand.u32 2147483648, %v669_v10  ;;  %vm708_vm8 = vcmp.eq.f32.partialorder %v669_v10, 0.0 }
 0x154   : > { %v681_v32 = vmul.f32 %v680_v28, %v667_v18  ;;  %v689_v35 = vmul.f32 %v887_v24, %v688_v31 }
 0x156   : > { %v683_v36 = vsel %vm682_vm3, %v667_v18, %v681_v32  ;;  %v690_v40 = vmul.f32 0.5, %v689_v35 }
 0x157   : > { %v686_v41 = vsel %vm684_vm4, %v685_v25, %v683_v36 }
 0x158   : > { %v774_v42 = vsel %vm773_vm2, %v686_v41, %v1156_v53  ;;  %v691_v43 = vsub.f32 1.5, %v690_v40  ;;  %v654_v44 = vpop.xlane.xlu1 %653 }
 0x159   : > { %v889_v45 = vpop.eup %888  ;;  %v782_v46 = vmul.f32 1.4142135, %v774_v42  ;;  %v670_v47 = vadd.f32 1.0, %v654_v44 }
 0x15a   : > { %v692_v48 = vmul.f32 %v887_v24, %v691_v43  ;;  %v700_v29 = vmul.f32 %v889_v45, %v669_v10 }
 0x15b   : > { %790 = vst.msk [vmem:[%s1217_s6] sm:$0xff] %vm191_vm1, %v782_v46  ;;  %890 = vrsqrt.f32 %v670_v47  ;;  %vm718_vm9 = vcmp.eq.f32.partialorder %v670_v47, inf  ;;  %v721_v21 = vand.u32 2147483648, %v670_v47  ;;  %vm720_vm10 = vcmp.eq.f32.partialorder %v670_v47, 0.0 }
 0x15c   : > { %v693_v49 = vmul.f32 %v692_v48, %v668_v14  ;;  %v701_v50 = vmul.f32 %v889_v45, %v700_v29 }
 0x15e   : > { %v695_v52 = vsel %vm694_vm5, %v668_v14, %v693_v49  ;;  %v702_v54 = vmul.f32 0.5, %v701_v50 }
 0x15f   : > { %v698_v55 = vsel %vm696_vm6, %v697_v51, %v695_v52 }
 0x160   : > { %v775_v53 = vsel %vm773_vm2, %v698_v55, %v1162_v1  ;;  %v703_v56 = vsub.f32 1.5, %v702_v54  ;;  %v657_v57 = vpop.xlane.xlu2 %656 }
 0x161   : > { %v891_v58 = vpop.eup %890  ;;  %v783_v59 = vmul.f32 1.4142135, %v775_v53  ;;  %v671_v33 = vadd.f32 1.0, %v657_v57 }
 0x162   : > { %v704_v60 = vmul.f32 %v889_v45, %v703_v56  ;;  %v712_v61 = vmul.f32 %v891_v58, %v670_v47 }
 0x163   : > { %791 = vst.msk [vmem:[%s1217_s6 + $0x8] sm:$0xff] %vm191_vm1, %v783_v59  ;;  %892 = vrsqrt.f32 %v671_v33  ;;  %vm730_vm11 = vcmp.eq.f32.partialorder %v671_v33, inf  ;;  %v733_v32 = vand.u32 2147483648, %v671_v33  ;;  %vm732_vm12 = vcmp.eq.f32.partialorder %v671_v33, 0.0 }
 0x164   : > { %v705_v62 = vmul.f32 %v704_v60, %v669_v10  ;;  %v713_v34 = vmul.f32 %v891_v58, %v712_v61 }
 0x166   : > { %v707_v2 = vsel %vm706_vm7, %v669_v10, %v705_v62  ;;  %v714_v3 = vmul.f32 0.5, %v713_v34 }
 0x167   : > { %v710_v6 = vsel %vm708_vm8, %v709_v0, %v707_v2 }
 0x168   : > { %v776_v1 = vsel %vm773_vm2, %v710_v6, %v1168_v4  ;;  %v715_v7 = vsub.f32 1.5, %v714_v3  ;;  %v660_v11 = vpop.xlane.xlu2 %659 }
 0x169   : > { %v893_v13 = vpop.eup %892  ;;  %v784_v37 = vmul.f32 1.4142135, %v776_v1  ;;  %v672_v38 = vadd.f32 1.0, %v660_v11 }
 0x16a   : > { %v716_v39 = vmul.f32 %v891_v58, %v715_v7  ;;  %v724_v12 = vmul.f32 %v893_v13, %v671_v33 }
 0x16b   : > { %792 = vst.msk [vmem:[%s1217_s6 + $0x10] sm:$0xff] %vm191_vm1, %v784_v37  ;;  %894 = vrsqrt.f32 %v672_v38  ;;  %vm742_vm13 = vcmp.eq.f32.partialorder %v672_v38, inf  ;;  %v745_v29 = vand.u32 2147483648, %v672_v38  ;;  %vm744_vm14 = vcmp.eq.f32.partialorder %v672_v38, 0.0 }
 0x16c   : > { %v717_v17 = vmul.f32 %v716_v39, %v670_v47  ;;  %v725_v18 = vmul.f32 %v893_v13, %v724_v12 }
 0x16e   : > { %v719_v8 = vsel %vm718_vm9, %v670_v47, %v717_v17  ;;  %v726_v14 = vmul.f32 0.5, %v725_v18 }
 0x16f   : > { %v722_v19 = vsel %vm720_vm10, %v721_v21, %v719_v8 }
 0x170   : > { %v777_v4 = vsel %vm773_vm2, %v722_v19, %v1175_v27  ;;  %v727_v22 = vsub.f32 1.5, %v726_v14  ;;  %v663_v15 = vpop.xlane.xlu0 %662 }
 0x171   : > { %v895_v20 = vpop.eup %894  ;;  %v785_v5 = vmul.f32 1.4142135, %v777_v4  ;;  %v673_v23 = vadd.f32 1.0, %v663_v15 }
 0x172   : > { %v728_v24 = vmul.f32 %v893_v13, %v727_v22  ;;  %v736_v10 = vmul.f32 %v895_v20, %v672_v38 }
 0x173   : > { %793 = vst.msk [vmem:[%s1217_s6 + $0x18] sm:$0xff] %vm191_vm1, %v785_v5  ;;  %896 = vrsqrt.f32 %v673_v23  ;;  %vm754_vm15 = vcmp.eq.f32.partialorder %v673_v23, inf  ;;  %v757_v59 = vand.u32 2147483648, %v673_v23  ;;  %vm756_vm0 = vcmp.eq.f32.partialorder %v673_v23, 0.0 }
 0x174   : > { %v729_v28 = vmul.f32 %v728_v24, %v671_v33  ;;  %v737_v31 = vmul.f32 %v895_v20, %v736_v10 }
 0x176   : > { %v731_v35 = vsel %vm730_vm11, %v671_v33, %v729_v28  ;;  %v738_v25 = vmul.f32 0.5, %v737_v31 }
 0x177   : > { %v734_v36 = vsel %vm732_vm12, %v733_v32, %v731_v35 }
 0x178   : > { %v778_v27 = vsel %vm773_vm2, %v734_v36, %v1183_v26  ;;  %v739_v40 = vsub.f32 1.5, %v738_v25  ;;  %v666_v41 = vpop.xlane.xlu1 %665 }
 0x179   : > { %v897_v42 = vpop.eup %896  ;;  %v786_v43 = vmul.f32 1.4142135, %v778_v27  ;;  %v674_v44 = vadd.f32 1.0, %v666_v41 }
 0x17a   : > { %v740_v45 = vmul.f32 %v895_v20, %v739_v40  ;;  %v748_v46 = vmul.f32 %v897_v42, %v673_v23 }
 0x17b   : > { %794 = vst.msk [vmem:[%s1217_s6 + $0x20] sm:$0xff] %vm191_vm1, %v786_v43  ;;  %898 = vrsqrt.f32 %v674_v44  ;;  %vm766_vm3 = vcmp.eq.f32.partialorder %v674_v44, inf  ;;  %v769_v3 = vand.u32 2147483648, %v674_v44  ;;  %vm768_vm4 = vcmp.eq.f32.partialorder %v674_v44, 0.0 }
 0x17c   : > { %v741_v47 = vmul.f32 %v740_v45, %v672_v38  ;;  %v749_v48 = vmul.f32 %v897_v42, %v748_v46 }
 0x17e   : > { %v743_v49 = vsel %vm742_vm13, %v672_v38, %v741_v47  ;;  %v750_v50 = vmul.f32 0.5, %v749_v48 }
 0x17f   : > { %v746_v51 = vsel %vm744_vm14, %v745_v29, %v743_v49 }
 0x180   : > { %v779_v26 = vsel %vm773_vm2, %v746_v51, %v1191_v30  ;;  %v751_v52 = vsub.f32 1.5, %v750_v50 }
 0x181   : > { %v899_v54 = vpop.eup %898  ;;  %v787_v55 = vmul.f32 1.4142135, %v779_v26 }
 0x182   : > { %v752_v53 = vmul.f32 %v897_v42, %v751_v52  ;;  %v760_v56 = vmul.f32 %v899_v54, %v674_v44 }
 0x183   : > { %795 = vst.msk [vmem:[%s1217_s6 + $0x28] sm:$0xff] %vm191_vm1, %v787_v55 }
 0x184   : > { %v753_v57 = vmul.f32 %v752_v53, %v673_v23  ;;  %v761_v58 = vmul.f32 %v899_v54, %v760_v56 }
 0x186   : > { %v755_v33 = vsel %vm754_vm15, %v673_v23, %v753_v57  ;;  %v762_v60 = vmul.f32 0.5, %v761_v58 }
 0x187   : > { %v758_v61 = vsel %vm756_vm0, %v757_v59, %v755_v33 }
 0x188   : > { %v780_v30 = vsel %vm773_vm2, %v758_v61, %v1199_v63  ;;  %v763_v62 = vsub.f32 1.5, %v762_v60 }
 0x189   : > { %v788_v34 = vmul.f32 1.4142135, %v780_v30 }
 0x18a   : > { %v764_v0 = vmul.f32 %v899_v54, %v763_v62 }
 0x18b   : > { %796 = vst.msk [vmem:[%s1217_s6 + $0x30] sm:$0xff] %vm191_vm1, %v788_v34 }
 0x18c   : > { %v765_v2 = vmul.f32 %v764_v0, %v674_v44 }
 0x18e   : > { %v767_v6 = vsel %vm766_vm3, %v674_v44, %v765_v2 }
 0x18f   : > { %v770_v1 = vsel %vm768_vm4, %v769_v3, %v767_v6 }
 0x190   : > { %v781_v7 = vsel %vm773_vm2, %v770_v1, %v1204_v16 }
 0x191   : > { %v789_v11 = vmul.f32 1.4142135, %v781_v7 }
 0x193   : > { %797 = vst.msk [vmem:[%s1217_s6 + $0x38] sm:$0xff] %vm191_vm1, %v789_v11 }
 0x194 PF: > { %s13_s12 = sadd.s32 1, %s906_s12  }
 0x195   : > { %p10_p4 = scmp.ge.s32.totalorder %s13_s12, 4  }
 0x197   :  { %12 = sbr.rel (!%p10_p4) target bundleno = 1 (0x1), region = 62 }

</bundles_post_ra>
